<compile_context>
chip_gen: v5e
topology: v5e:2x2
jax: 0.10.0
libtpu: 0.0.40
codegen_flags: <defaults>
</compile_context>

<pallas_src>
import numpy as np
import jax
import jax.numpy as jnp
from jax import lax
from jax.experimental import pallas as pl
from jax.experimental.pallas import tpu as pltpu


def _round_up(x, m):
    return (x + m - 1) // m * m


def cov_stats_kernel(q_ref, qn_ref, s_ref, sn_ref, minmask_ref, valid_ref,
                     stats_ref, min_sc, sum_sc):
    """One (TM, TN) tile of the pairwise distance matrix.

    q_ref      : (TM, D)  f32  inseqQ row strip (zero-padded rows ok)
    qn_ref     : (TM, 1)  f32  ||inseqQ_i||^2 strip
    s_ref      : (TN, D)  f32  inseqS column tile (zero-padded rows ok)
    sn_ref     : (1, TN)  f32  ||inseqS_j||^2 tile
    minmask_ref: (1, TN)  f32  sum_idx mask (0 on padded / unselected cols)
    valid_ref  : (1, TN)  f32  1.0 for real columns, 0.0 for padding
    stats_ref  : (TM, 128) f32 out; lane 0 = masked row-min, lane 1 = row-sum
    min_sc     : (TM, 1)  f32  running masked row-min   (VMEM scratch)
    sum_sc     : (TM, 1)  f32  running row-sum          (VMEM scratch)
    """
    j = pl.program_id(1)

    @pl.when(j == 0)
    def _():
        min_sc[...] = jnp.full_like(min_sc, jnp.inf)
        sum_sc[...] = jnp.zeros_like(sum_sc)

    # cross[i, j] = q_i . s_j  -- MXU contraction over axis 1 of both
    # operands (transposed-RHS handled natively; default precision).
    cross = lax.dot_general(
        q_ref[...], s_ref[...],
        dimension_numbers=(((1,), (1,)), ((), ())),
        preferred_element_type=jnp.float32)                # (TM, TN)

    # Gram trick: d2[i,j] = ||q_i||^2 + ||s_j||^2 - 2 q_i.s_j  (clamped >= 0)
    d2 = jnp.maximum(qn_ref[...] + sn_ref[...] - 2.0 * cross, 0.0)
    dist = jnp.sqrt(d2)                                     # single (TM,TN) temp

    # Padded columns excluded from the mean; sum_idx mask folded into the min.
    sum_sc[...] += jnp.sum(dist * valid_ref[...], axis=1, keepdims=True)
    tile_min = jnp.min(jnp.where(minmask_ref[...] != 0.0, dist, jnp.inf),
                       axis=1, keepdims=True)
    min_sc[...] = jnp.minimum(min_sc[...], tile_min)

    @pl.when(j == pl.num_programs(1) - 1)
    def _():
        lane = lax.broadcasted_iota(jnp.int32, stats_ref.shape, 1)
        stats_ref[...] = jnp.where(lane == 0, min_sc[...],
                                   jnp.where(lane == 1, sum_sc[...], 0.0))


def cov_forward(seq, qvs_idx, sum_idx, weight, bias, *, tm=None, tn=None):
    """Python/JAX glue around the Pallas kernel."""
    seq = jnp.asarray(seq, jnp.float32)
    n, d = seq.shape
    qvs_idx = jnp.asarray(qvs_idx, jnp.float32).reshape(n, 1)
    sum_idx = jnp.asarray(sum_idx, jnp.float32).reshape(n, 1)
    weight = jnp.asarray(weight, jnp.float32)               # (in_dim=1, out_dim)
    bias = jnp.asarray(bias, jnp.float32)                   # (out_dim,)

    # Degenerate path (torch: sum_idxs.numel() == 0). Host-side, data-dependent
    # branch: call this wrapper eagerly (resolve before jitting surrounding code).
    if not bool(np.any(np.asarray(sum_idx) != 0)):
        return jnp.zeros((1,), jnp.float32) @ weight + bias

    # Row tile (multiple of 8 sublanes).
    if tm is None:
        tm = min(256, _round_up(n, 8))
    tm = _round_up(tm, 8)
    n_pad_r = _round_up(n, tm)

    # Column tile (multiple of 128 lanes).  Prefer the biggest tile that
    # divides the lane-padded column count without extra padding waste.
    n_pad_c = _round_up(n, 128)
    if tn is None:
        tn = 128
        for cand in (512, 256, 128):
            if n_pad_c % cand == 0:
                tn = cand
                break
    tn = _round_up(tn, 128)
    n_pad_c = _round_up(n_pad_c, tn)

    # Cheap O(N*D) prep in XLA: inseqQ/inseqS and their squared row norms,
    # the sum mask and a padding-validity row -- avoids per-tile recompute
    # and any in-kernel transpose.
    q_full = seq * qvs_idx                                   # (N, D)
    qn_full = jnp.sum(q_full * q_full, axis=1, keepdims=True)
    s_full = seq * sum_idx                                   # (N, D)
    sn_full = jnp.sum(s_full * s_full, axis=1)

    q_pad = jnp.pad(q_full, ((0, n_pad_r - n), (0, 0)))
    qn_pad = jnp.pad(qn_full, ((0, n_pad_r - n), (0, 0)))
    s_pad = jnp.pad(s_full, ((0, n_pad_c - n), (0, 0)))
    sn_row = jnp.pad(sn_full, (0, n_pad_c - n)).reshape(1, n_pad_c)
    minmask_row = jnp.pad(sum_idx[:, 0], (0, n_pad_c - n)).reshape(1, n_pad_c)
    valid_row = (jnp.arange(n_pad_c) < n).astype(jnp.float32).reshape(1, n_pad_c)

    grid = (n_pad_r // tm, n_pad_c // tn)

    grid_spec = pltpu.PrefetchScalarGridSpec(
        num_scalar_prefetch=0,
        grid=grid,
        in_specs=[
            pl.BlockSpec((tm, d), lambda i, j: (i, 0)),      # inseqQ strip
            pl.BlockSpec((tm, 1), lambda i, j: (i, 0)),      # ||q||^2 strip
            pl.BlockSpec((tn, d), lambda i, j: (j, 0)),      # inseqS tile
            pl.BlockSpec((1, tn), lambda i, j: (0, j)),      # ||s||^2 tile
            pl.BlockSpec((1, tn), lambda i, j: (0, j)),      # sum mask tile
            pl.BlockSpec((1, tn), lambda i, j: (0, j)),      # column validity
        ],
        out_specs=pl.BlockSpec((tm, 128), lambda i, j: (i, 0)),
        scratch_shapes=[pltpu.VMEM((tm, 1), jnp.float32),    # running min
                        pltpu.VMEM((tm, 1), jnp.float32)],   # running sum
    )

    stats = pl.pallas_call(
        cov_stats_kernel,
        out_shape=jax.ShapeDtypeStruct((n_pad_r, 128), jnp.float32),
        grid_spec=grid_spec,
        compiler_params=pltpu.CompilerParams(
            dimension_semantics=("parallel", "arbitrary")),
    )(q_pad, qn_pad, s_pad, sn_row, minmask_row, valid_row)

    # O(N) finalize + the 1-wide affine stay in XLA (the kernel output is
    # lane-dense; no (N, 1) masked stores from inside the kernel).
    stats = stats[:n]
    minv = stats[:, 0:1]                                     # (N, 1)
    norm = jnp.sum(stats[:, 1]) / float(n * n)               # mean of SeqDistS
    simcov = 1.0 - jnp.minimum(minv, norm) / norm            # (N, 1)
    return simcov @ weight + bias                            # (N, out_dim)


def cov_reference(seq, qvs_idx, sum_idx, weight, bias):
    """Pure-JAX reference (mirrors the PyTorch code literally)."""
    seq = jnp.asarray(seq, jnp.float32)
    qvs_idx = jnp.asarray(qvs_idx, jnp.float32).reshape(-1, 1)
    sum_idx = jnp.asarray(sum_idx, jnp.float32).reshape(-1, 1)
    inseqS = seq * sum_idx
    inseqQ = seq * qvs_idx
    dist = jnp.sqrt(jnp.sum((inseqQ[:, None, :] - inseqS[None, :, :]) ** 2,
                            axis=2))
    norm = dist.mean()
    col_mask = (sum_idx[:, 0] != 0)[None, :]
    masked = jnp.where(col_mask, dist, jnp.inf)
    minv = jnp.min(masked, axis=1, keepdims=True)
    simcov = 1.0 - jnp.minimum(minv, norm) / norm
    return simcov @ weight + bias


if __name__ == "__main__":
    in_dim, out_dim = 1, 1  # `scalar = 1` in the reference module

    key = jax.random.PRNGKey(0)
    (k_seq, k_q, k_s, k_w, k_b,
     k_seq2, k_q2, k_s2, k_seq3, k_q3, k_s3) = jax.random.split(key, 11)

    # Deterministic parameter init matching layers.reset_parameters:
    # uniform(0, 1/sqrt(out_dim))
    stdv = 1.0 / np.sqrt(out_dim)
    weight = jax.random.uniform(k_w, (in_dim, out_dim),
                                minval=0.0, maxval=stdv, dtype=jnp.float32)
    bias = jax.random.uniform(k_b, (out_dim,),
                              minval=0.0, maxval=stdv, dtype=jnp.float32)

    # Case 1: module-native tiny shapes (single row/column tile).
    N, D = 8, 32
    seq = jax.random.normal(k_seq, (N, D), dtype=jnp.float32)
    qvs_idx = (jax.random.uniform(k_q, (N, 1)) > 0.5).astype(jnp.float32)
    sum_idx = (jax.random.uniform(k_s, (N, 1)) > 0.5).astype(jnp.float32)
    sum_idx = sum_idx.at[0, 0].set(1.0)   # guarantee >= 1 selected column

    out = jax.block_until_ready(cov_forward(seq, qvs_idx, sum_idx, weight, bias))
    ref = cov_reference(seq, qvs_idx, sum_idx, weight, bias)
    # Tolerance 2e-3: the cross term runs at default MXU precision
    # (f32 accumulate), no HIGHEST emulation passes.
    np.testing.assert_allclose(np.asarray(out), np.asarray(ref),
                               rtol=2e-3, atol=2e-3)

    # Case 2: non-multiple N with a forced small row tile -> exercises the
    # row grid (3 steps), query-row zero padding, and column lane padding.
    N2, D2 = 41, 32
    seq2 = jax.random.normal(k_seq2, (N2, D2), dtype=jnp.float32)
    qvs2 = (jax.random.uniform(k_q2, (N2, 1)) > 0.5).astype(jnp.float32)
    sum2 = (jax.random.uniform(k_s2, (N2, 1)) > 0.5).astype(jnp.float32)
    sum2 = sum2.at[0, 0].set(1.0)

    out2 = jax.block_until_ready(
        cov_forward(seq2, qvs2, sum2, weight, bias, tm=16))
    ref2 = cov_reference(seq2, qvs2, sum2, weight, bias)
    np.testing.assert_allclose(np.asarray(out2), np.asarray(ref2),
                               rtol=2e-3, atol=2e-3)

    # Case 3: multiple column tiles -> exercises the running min/sum
    # accumulators across the "arbitrary" reduction axis.
    N3, D3 = 200, 32
    seq3 = jax.random.normal(k_seq3, (N3, D3), dtype=jnp.float32)
    qvs3 = (jax.random.uniform(k_q3, (N3, 1)) > 0.5).astype(jnp.float32)
    sum3 = (jax.random.uniform(k_s3, (N3, 1)) > 0.5).astype(jnp.float32)
    sum3 = sum3.at[0, 0].set(1.0)

    out3 = jax.block_until_ready(
        cov_forward(seq3, qvs3, sum3, weight, bias, tm=64, tn=128))
    ref3 = cov_reference(seq3, qvs3, sum3, weight, bias)
    np.testing.assert_allclose(np.asarray(out3), np.asarray(ref3),
                               rtol=2e-3, atol=2e-3)

    print("KERNEL_OK")
</pallas_src>

<mosaic_0001>
module attributes {stable_mosaic.version = 11 : i64} {
  func.func @cov_stats_kernel(%arg0: i32, %arg1: i32, %arg2: memref<8x32xf32, #tpu.memory_space<vmem>>, %arg3: memref<8x1xf32, #tpu.memory_space<vmem>>, %arg4: memref<128x32xf32, #tpu.memory_space<vmem>>, %arg5: memref<1x128xf32, #tpu.memory_space<vmem>>, %arg6: memref<1x128xf32, #tpu.memory_space<vmem>>, %arg7: memref<1x128xf32, #tpu.memory_space<vmem>>, %arg8: memref<8x128xf32, #tpu.memory_space<vmem>>, %arg9: memref<8x1xf32, #tpu.memory_space<vmem>>, %arg10: memref<8x1xf32, #tpu.memory_space<vmem>>) attributes {dimension_semantics = [#tpu.dimension_semantics<parallel>, #tpu.dimension_semantics<arbitrary>], iteration_bounds = array<i64: 1, 1>, scalar_prefetch = 0 : i64, scratch_operands = 2 : i64, tpu.core_type = #tpu.core_type<tc>, window_params = [{transform_indices = @transform_0, window_bounds = array<i64: 8, 32>}, {transform_indices = @transform_1, window_bounds = array<i64: 8, 1>}, {transform_indices = @transform_2, window_bounds = array<i64: 128, 32>}, {transform_indices = @transform_3, window_bounds = array<i64: 1, 128>}, {transform_indices = @transform_4, window_bounds = array<i64: 1, 128>}, {transform_indices = @transform_5, window_bounds = array<i64: 1, 128>}, {transform_indices = @transform_6, window_bounds = array<i64: 8, 128>}]} {
    %c0_i32 = arith.constant 0 : i32
    %0 = arith.cmpi eq, %arg1, %c0_i32 : i32
    %1 = arith.extui %0 : i1 to i32
    %c0_i32_0 = arith.constant 0 : i32
    %2 = arith.cmpi ne, %1, %c0_i32_0 : i32
    scf.if %2 {
      %cst_28 = arith.constant 0x7F800000 : f32
      %40 = vector.broadcast %cst_28 : f32 to vector<8x1xf32>
      %c0_29 = arith.constant 0 : index
      %c0_30 = arith.constant 0 : index
      %41 = vector.load %arg9[%c0_29, %c0_30] : memref<8x1xf32, #tpu.memory_space<vmem>>, vector<8x1xf32>
      tpu.vector_store %arg9[%c0_29, %c0_30], %40 {strides = array<i32>} : memref<8x1xf32, #tpu.memory_space<vmem>>, vector<8x1xf32>,
      %cst_31 = arith.constant 0.000000e+00 : f32
      %42 = vector.broadcast %cst_31 : f32 to vector<8x1xf32>
      %c0_32 = arith.constant 0 : index
      %c0_33 = arith.constant 0 : index
      %43 = vector.load %arg10[%c0_32, %c0_33] : memref<8x1xf32, #tpu.memory_space<vmem>>, vector<8x1xf32>
      tpu.vector_store %arg10[%c0_32, %c0_33], %42 {strides = array<i32>} : memref<8x1xf32, #tpu.memory_space<vmem>>, vector<8x1xf32>,
    } else {
    }
    %c0 = arith.constant 0 : index
    %c0_1 = arith.constant 0 : index
    %3 = vector.load %arg2[%c0, %c0_1] : memref<8x32xf32, #tpu.memory_space<vmem>>, vector<8x32xf32>
    %c0_2 = arith.constant 0 : index
    %c0_3 = arith.constant 0 : index
    %4 = vector.load %arg4[%c0_2, %c0_3] : memref<128x32xf32, #tpu.memory_space<vmem>>, vector<128x32xf32>
    %cst = arith.constant dense<0.000000e+00> : vector<8x128xf32>
    %5 = tpu.matmul %3, %4, %cst {dimension_numbers = #tpu.dot_dimension_numbers<[1], [1], [0], [0], [0, 0, 1, 0], [], []>} : vector<8x32xf32>, vector<128x32xf32>, vector<8x128xf32> -> vector<8x128xf32>
    %c0_4 = arith.constant 0 : index
    %c0_5 = arith.constant 0 : index
    %6 = vector.load %arg3[%c0_4, %c0_5] : memref<8x1xf32, #tpu.memory_space<vmem>>, vector<8x1xf32>
    %c0_6 = arith.constant 0 : index
    %c0_7 = arith.constant 0 : index
    %7 = vector.load %arg5[%c0_6, %c0_7] : memref<1x128xf32, #tpu.memory_space<vmem>>, vector<1x128xf32>
    %8 = vector.broadcast %6 : vector<8x1xf32> to vector<8x128xf32>
    %9 = vector.broadcast %7 : vector<1x128xf32> to vector<8x128xf32>
    %10 = arith.addf %8, %9 : vector<8x128xf32>
    %cst_8 = arith.constant 2.000000e+00 : f32
    %11 = vector.broadcast %cst_8 : f32 to vector<8x128xf32>
    %12 = arith.mulf %11, %5 : vector<8x128xf32>
    %13 = arith.subf %10, %12 : vector<8x128xf32>
    %cst_9 = arith.constant 0.000000e+00 : f32
    %14 = vector.broadcast %cst_9 : f32 to vector<8x128xf32>
    %15 = arith.maximumf %13, %14 : vector<8x128xf32>
    %16 = math.sqrt %15 : vector<8x128xf32>
    %c0_10 = arith.constant 0 : index
    %c0_11 = arith.constant 0 : index
    %17 = vector.load %arg10[%c0_10, %c0_11] : memref<8x1xf32, #tpu.memory_space<vmem>>, vector<8x1xf32>
    %c0_12 = arith.constant 0 : index
    %c0_13 = arith.constant 0 : index
    %18 = vector.load %arg7[%c0_12, %c0_13] : memref<1x128xf32, #tpu.memory_space<vmem>>, vector<1x128xf32>
    %19 = vector.broadcast %18 : vector<1x128xf32> to vector<8x128xf32>
    %20 = arith.mulf %16, %19 : vector<8x128xf32>
    %cst_14 = arith.constant dense<0.000000e+00> : vector<8xf32>
    %21 = vector.multi_reduction <add>, %20, %cst_14 [1] : vector<8x128xf32> to vector<8xf32>
    %22 = vector.shape_cast %21 : vector<8xf32> to vector<8x1xf32>
    %23 = arith.addf %17, %22 : vector<8x1xf32>
    %c0_15 = arith.constant 0 : index
    %c0_16 = arith.constant 0 : index
    %24 = vector.load %arg10[%c0_15, %c0_16] : memref<8x1xf32, #tpu.memory_space<vmem>>, vector<8x1xf32>
    tpu.vector_store %arg10[%c0_15, %c0_16], %23 {strides = array<i32>} : memref<8x1xf32, #tpu.memory_space<vmem>>, vector<8x1xf32>,
    %c0_17 = arith.constant 0 : index
    %c0_18 = arith.constant 0 : index
    %25 = vector.load %arg6[%c0_17, %c0_18] : memref<1x128xf32, #tpu.memory_space<vmem>>, vector<1x128xf32>
    %cst_19 = arith.constant 0.000000e+00 : f32
    %26 = vector.broadcast %cst_19 : f32 to vector<1x128xf32>
    %27 = arith.cmpf one, %25, %26 : vector<1x128xf32>
    %cst_20 = arith.constant 0x7F800000 : f32
    %28 = vector.shape_cast %27 : vector<1x128xi1> to vector<1x128xi1>
    %29 = vector.broadcast %28 : vector<1x128xi1> to vector<8x128xi1>
    %30 = vector.broadcast %cst_20 : f32 to vector<8x128xf32>
    %31 = arith.select %29, %16, %30 : vector<8x128xi1>, vector<8x128xf32>
    %cst_21 = arith.constant dense<0x7F800000> : vector<8xf32>
    %32 = vector.multi_reduction <minimumf>, %31, %cst_21 [1] : vector<8x128xf32> to vector<8xf32>
    %33 = vector.shape_cast %32 : vector<8xf32> to vector<8x1xf32>
    %c0_22 = arith.constant 0 : index
    %c0_23 = arith.constant 0 : index
    %34 = vector.load %arg9[%c0_22, %c0_23] : memref<8x1xf32, #tpu.memory_space<vmem>>, vector<8x1xf32>
    %35 = arith.minimumf %34, %33 : vector<8x1xf32>
    %c0_24 = arith.constant 0 : index
    %c0_25 = arith.constant 0 : index
    %36 = vector.load %arg9[%c0_24, %c0_25] : memref<8x1xf32, #tpu.memory_space<vmem>>, vector<8x1xf32>
    tpu.vector_store %arg9[%c0_24, %c0_25], %35 {strides = array<i32>} : memref<8x1xf32, #tpu.memory_space<vmem>>, vector<8x1xf32>,
    %c0_i32_26 = arith.constant 0 : i32
    %37 = arith.cmpi eq, %arg1, %c0_i32_26 : i32
    %38 = arith.extui %37 : i1 to i32
    %c0_i32_27 = arith.constant 0 : i32
    %39 = arith.cmpi ne, %38, %c0_i32_27 : i32
    scf.if %39 {
      %40 = tpu.iota {dimensions = array<i32: 1>} : vector<8x128xi32>
      %c0_i32_28 = arith.constant 0 : i32
      %41 = vector.broadcast %c0_i32_28 : i32 to vector<8x128xi32>
      %42 = arith.cmpi eq, %40, %41 : vector<8x128xi32>
      %c0_29 = arith.constant 0 : index
      %c0_30 = arith.constant 0 : index
      %43 = vector.load %arg9[%c0_29, %c0_30] : memref<8x1xf32, #tpu.memory_space<vmem>>, vector<8x1xf32>
      %c1_i32 = arith.constant 1 : i32
      %44 = vector.broadcast %c1_i32 : i32 to vector<8x128xi32>
      %45 = arith.cmpi eq, %40, %44 : vector<8x128xi32>
      %c0_31 = arith.constant 0 : index
      %c0_32 = arith.constant 0 : index
      %46 = vector.load %arg10[%c0_31, %c0_32] : memref<8x1xf32, #tpu.memory_space<vmem>>, vector<8x1xf32>
      %cst_33 = arith.constant 0.000000e+00 : f32
      %47 = vector.shape_cast %46 : vector<8x1xf32> to vector<8x1xf32>
      %48 = vector.broadcast %47 : vector<8x1xf32> to vector<8x128xf32>
      %49 = vector.broadcast %cst_33 : f32 to vector<8x128xf32>
      %50 = arith.select %45, %48, %49 : vector<8x128xi1>, vector<8x128xf32>
      %51 = vector.shape_cast %43 : vector<8x1xf32> to vector<8x1xf32>
      %52 = vector.broadcast %51 : vector<8x1xf32> to vector<8x128xf32>
      %53 = arith.select %42, %52, %50 : vector<8x128xi1>, vector<8x128xf32>
      %c0_34 = arith.constant 0 : index
      %c0_35 = arith.constant 0 : index
      %54 = vector.load %arg8[%c0_34, %c0_35] : memref<8x128xf32, #tpu.memory_space<vmem>>, vector<8x128xf32>
      tpu.vector_store %arg8[%c0_34, %c0_35], %53 {strides = array<i32>} : memref<8x128xf32, #tpu.memory_space<vmem>>, vector<8x128xf32>,
    } else {
    }
    return
  }
  func.func @transform_0(%arg0: i32, %arg1: i32) -> (i32, i32) {
    %c0_i32 = arith.constant 0 : i32
    %c0_i32_0 = arith.constant 0 : i32
    return %arg0, %c0_i32 : i32, i32
  }
  func.func @transform_1(%arg0: i32, %arg1: i32) -> (i32, i32) {
    %c0_i32 = arith.constant 0 : i32
    %c0_i32_0 = arith.constant 0 : i32
    return %arg0, %c0_i32 : i32, i32
  }
  func.func @transform_2(%arg0: i32, %arg1: i32) -> (i32, i32) {
    %c0_i32 = arith.constant 0 : i32
    %c0_i32_0 = arith.constant 0 : i32
    return %arg1, %c0_i32 : i32, i32
  }
  func.func @transform_3(%arg0: i32, %arg1: i32) -> (i32, i32) {
    %c0_i32 = arith.constant 0 : i32
    %c0_i32_0 = arith.constant 0 : i32
    return %c0_i32, %arg1 : i32, i32
  }
  func.func @transform_4(%arg0: i32, %arg1: i32) -> (i32, i32) {
    %c0_i32 = arith.constant 0 : i32
    %c0_i32_0 = arith.constant 0 : i32
    return %c0_i32, %arg1 : i32, i32
  }
  func.func @transform_5(%arg0: i32, %arg1: i32) -> (i32, i32) {
    %c0_i32 = arith.constant 0 : i32
    %c0_i32_0 = arith.constant 0 : i32
    return %c0_i32, %arg1 : i32, i32
  }
  func.func @transform_6(%arg0: i32, %arg1: i32) -> (i32, i32) {
    %c0_i32 = arith.constant 0 : i32
    %c0_i32_0 = arith.constant 0 : i32
    return %arg0, %c0_i32 : i32, i32
  }
}

</mosaic_0001>

<bundles_post_ra>
// kernel: tpu_custom_call.1
= control target key start
LH: loop header
LB: loop body
LE: loop exit
PB: predicated region body
PF: predicated region fallthrough
CT: control target
= control target key end

     0   :  { %vm48_vm0 = vcmask 261120   ;;  %s382_s0 = inlined_call_operand.vmem [shape: f32[8,32], index: 0, kind: input, shape index: {}]   ;;  %s383_s1 = inlined_call_operand.vmem [shape: f32[8,1], index: 1, kind: input, shape index: {}]   ;;  %s384_s2 = inlined_call_operand.vmem [shape: f32[128,32], index: 2, kind: input, shape index: {}]   ;;  %s385_s3 = inlined_call_operand.vmem [shape: f32[1,128], index: 3, kind: input, shape index: {}]   ;;  %s386_s4 = inlined_call_operand.vmem [shape: f32[1,128], index: 4, kind: input, shape index: {}]   ;;  %s387_s5 = inlined_call_operand.vmem [shape: f32[1,128], index: 5, kind: input, shape index: {}]   ;;  %s388_s6 = inlined_call_operand.hbm [shape: f32[8,128], index: 6, kind: output, shape index: {}]  }
   0x1   :  { %v47_v0 = vld [vmem:[%s384_s2 + $0x78] sm:$0xff]  ;;  %v46_v1 = vld [vmem:[%s384_s2 + $0x70] sm:$0xff] }
   0x2   :  { %206 = vmatpush.xpose.msk.msra.mxu0 %vm48_vm0, %v47_v0 }
   0x3   :  { %11 = vsyncpa [#allocation5], 0  ;;  %v45_v2 = vld [vmem:[%s384_s2 + $0x68] sm:$0xff]  ;;  %v44_v3 = vld [vmem:[%s384_s2 + $0x60] sm:$0xff]  ;;  %v260_v10 = vmov 0   ;;  %vm28_vm5 = vcmask 7168   ;;  %v171_v52 = vlaneseq }
   0x4   :  { %v43_v4 = vld [vmem:[%s384_s2 + $0x58] sm:$0xff]  ;;  %v42_v5 = vld [vmem:[%s384_s2 + $0x50] sm:$0xff]  ;;  %v41_v6 = vld [vmem:[%s384_s2 + $0x48] sm:$0xff]  ;;  %227 = vset.pattern.permute.xlu0 %v260_v10  ;;  %229 = vset.pattern.permute.xlu2 %v260_v10  ;;  %v261_v42 = vmov inf   ;;  %v262_v43 = vmov 0.0   ;;  %s197_s13 = sshll.u32 %s388_s6, 4  ;;  %s198_s13 = int_to_ptr.hbm [resolvable:$true] %s197_s13 }
   0x5   :  { %v40_v7 = vld [vmem:[%s384_s2 + $0x40] sm:$0xff]  ;;  %v39_v8 = vld [vmem:[%s384_s2 + $0x38] sm:$0xff]  ;;  %v38_v11 = vld [vmem:[%s384_s2 + $0x30] sm:$0xff]  ;;  %228 = vset.pattern.permute.xlu1 %v260_v10  ;;  %29 = vst.msk [vmem:[#allocation2] sm:$0xff] %vm28_vm5, %v261_v42  ;;  %v172_v53 = vand.u32 127, %v171_v52 }
   0x6   :  { %207 = vmatpush.xpose.msk.msra.mxu0 %vm48_vm0, %v46_v1  ;;  %v120_v9 = vld [vmem:[%s383_s1] sm:$0xff]  ;;  %v37_v12 = vld [vmem:[%s384_s2 + $0x28] sm:$0xff]  ;;  %v35_v14 = vld [vmem:[%s384_s2 + $0x18] sm:$0xff]  ;;  %30 = vst.msk [vmem:[#allocation3] sm:$0xff] %vm28_vm5, %v262_v43 }
   0x7   :  { %124 = vperm.xlu0 %227, %v120_v9   ;;  %v36_v13 = vld [vmem:[%s384_s2 + $0x20] sm:$0xff]  ;;  %v34_v15 = vld [vmem:[%s384_s2 + $0x10] sm:$0xff]  ;;  %v33_v16 = vld [vmem:[%s384_s2 + $0x8] sm:$0xff]  ;;  %vm175_vm6 = vcmp.eq.s32.totalorder %v172_v53, 1  ;;  %vm173_vm7 = vcmp.eq.s32.totalorder %v172_v53, 0 }
   0x8   :  { %v32_v17 = vld [vmem:[%s384_s2] sm:$0xff] }
   0x9   :  { %v31_v18 = vld [vmem:[%s382_s0] sm:$0xff] }
   0xa   :  { %208 = vmatpush.xpose.msk.msra.mxu0 %vm48_vm0, %v45_v2  ;;  %v230_v19 = vld [vmem:[%s385_s3] ss:$0 sm:$0xff] }
   0xb   :  { %v157_v26 = vld [vmem:[%s386_s4] sm:$0x1]  ;;  %s263_s4 = smov [#allocation4]  }
   0xc   :  { %vm158_vm1 = vcmp.ne.f32.partialorder %v157_v26, 0.0  ;;  %v231_v36 = vld [vmem:[%s387_s5] ss:$0 sm:$0xff]  ;;  %s195_s5 = sshll.u32 %s263_s4, 4  ;;  %s196_s5 = int_to_ptr.vmem [resolvable:$true] %s195_s5 }
   0xd   :  { %v159_v31 = vsel %vm158_vm1, 1, %v260_v10  ;;  %v165_v44 = vld [vmem:[#allocation2] sm:$0xff]  ;;  %v146_v45 = vld [vmem:[#allocation3] sm:$0xff] }
   0xe   :  { %209 = vmatpush.xpose.msk.msra.mxu0 %vm48_vm0, %v44_v3  ;;  %v160_v33 = vperm.slane %v159_v31, 0 }
  0x10   :  { %vm161_vm3 = vcmp.eq.s32.totalorder %v160_v33, 1 }
  0x12   :  { %210 = vmatpush.xpose.msk.msra.mxu0 %vm48_vm0, %v43_v4 }
  0x16   :  { %211 = vmatpush.xpose.msk.msra.mxu0 %vm48_vm0, %v42_v5 }
  0x1a   :  { %212 = vmatpush.xpose.msk.msra.mxu0 %vm48_vm0, %v41_v6 }
  0x1e   :  { %213 = vmatpush.xpose.msk.msra.mxu0 %vm48_vm0, %v40_v7 }
  0x22   :  { %214 = vmatpush.xpose.msk.msra.mxu0 %vm48_vm0, %v39_v8 }
  0x26   :  { %215 = vmatpush.xpose.msk.msra.mxu0 %vm48_vm0, %v38_v11 }
  0x2a   :  { %216 = vmatpush.xpose.msk.msra.mxu0 %vm48_vm0, %v37_v12 }
  0x2e   :  { %217 = vmatpush.xpose.msk.msra.mxu0 %vm48_vm0, %v36_v13 }
  0x32   :  { %218 = vmatpush.xpose.msk.msra.mxu0 %vm48_vm0, %v35_v14 }
  0x36   :  { %219 = vmatpush.xpose.msk.msra.mxu0 %vm48_vm0, %v34_v15 }
  0x3a   :  { %220 = vmatpush.xpose.msk.msra.mxu0 %vm48_vm0, %v33_v16 }
  0x3e   :  { %221 = vmatpush.xpose.msk.msra.mxu0 %vm48_vm0, %v32_v17 }
  0x41   :  { %222 = vmatmul.msk.f32.vlgmr.msra.gmra.mxu0 %vm48_vm0, %v31_v18 }
  0x79   :  { %v125_v20 = vpop.permute.xlu0 %124 }
  0x7a   :  { %v130_v21 = vadd.f32 %v230_v19, %v125_v20 }
  0xbe   :  { %v117_v22 = vpop.f32.mrf.mxu0 }
  0xbf   :  { %v131_v23 = vmul.f32 2.0, %v117_v22 }
  0xc1   :  { %v132_v24 = vsub.f32 %v130_v21, %v131_v23 }
  0xc3   :  { %v133_v25 = vmax.f32 %v132_v24, 0.0 }
  0xc5   :  { %232 = vrsqrt.f32 %v133_v25  ;;  %vm141_vm2 = vcmp.eq.f32.partialorder %v133_v25, inf  ;;  %v144_v37 = vand.u32 2147483648, %v133_v25  ;;  %vm143_vm4 = vcmp.eq.f32.partialorder %v133_v25, 0.0 }
  0xcb   :  { %v233_v27 = vpop.eup %232 }
  0xcc   :  { %v135_v28 = vmul.f32 %v233_v27, %v133_v25 }
  0xce   :  { %v136_v29 = vmul.f32 %v233_v27, %v135_v28 }
  0xd0   :  { %v137_v30 = vmul.f32 0.5, %v136_v29 }
  0xd2   :  { %v138_v32 = vsub.f32 1.5, %v137_v30 }
  0xd4   :  { %v139_v34 = vmul.f32 %v233_v27, %v138_v32 }
  0xd6   :  { %v140_v35 = vmul.f32 %v139_v34, %v133_v25 }
  0xd8   :  { %v142_v38 = vsel %vm141_vm2, %v133_v25, %v140_v35 }
  0xd9   :  { %v145_v39 = vsel %vm143_vm4, %v144_v37, %v142_v38 }
  0xda   :  { %v162_v40 = vsel %vm161_vm3, %v145_v39, inf  ;;  %v151_v41 = vmul.f32 %v231_v36, %v145_v39 }
  0xdb   :  { %163 = vmin.xlane.f32.xlu1 %v162_v40 }
  0xdc   :  { %152 = vadd.xlane.f32.xlu0 %v151_v41 }
 0x14e   :  { %v164_v46 = vpop.xlane.xlu1 %163 }
 0x14f   :  { %v166_v47 = vmin.f32 %v165_v44, %v164_v46  ;;  %v153_v48 = vpop.xlane.xlu0 %152 }
 0x150   :  { %v154_v49 = vadd.f32 %v153_v48, %v146_v45 }
 0x151   :  { %167 = vst.msk [vmem:[#allocation2] sm:$0xff] %vm28_vm5, %v166_v47 }
 0x152   :  { %156 = vst.msk [vmem:[#allocation3] sm:$0xff] %vm28_vm5, %v154_v49 }
 0x158   :  { %v174_v50 = vld [vmem:[#allocation2] sm:$0xff] }
 0x159   :  { %185 = vperm.xlu2 %229, %v174_v50   ;;  %v176_v51 = vld [vmem:[#allocation3] sm:$0xff] }
 0x15a   :  { %179 = vperm.xlu1 %228, %v176_v51  }
 0x1b3   :  { %v186_v55 = vpop.permute.xlu2 %185 }
 0x1cc   :  { %v180_v54 = vpop.permute.xlu1 %179 }
 0x1cd   :  { %v182_v56 = vsel %vm175_vm6, %v180_v54, 0.0 }
 0x1ce   :  { %v188_v57 = vsel %vm173_vm7, %v186_v55, %v182_v56 }
 0x1cf   :  { %189 = vst [vmem:[#allocation4] sm:$0xff] %v188_v57 }
 0x1d0   :  { %200 = dma.vmem_to_hbm [thread:$0]  %s196_s5, 128, %s198_s13, [#allocation5]  }
 0x1d1   :  { %258 = dma.done.wait [#allocation5], 128  }
 0x1d2   :  { %259 = vsyncadd [#allocation5], 4294967168 }
 0x1d3   :  { %205 = vsyncpa [#allocation5], 1 }

</bundles_post_ra>
